<compile_context>
chip_gen: v5e
topology: v5e:2x2
jax: 0.10.0
libtpu: 0.0.40
codegen_flags: <defaults>
</compile_context>

<pallas_src>
import math

import jax
import jax.numpy as jnp
from jax.experimental import pallas as pl
from jax.experimental.pallas import tpu as pltpu


# ----------------------------------------------------------------------------
# Kernel
# ----------------------------------------------------------------------------
def _cheb_graph_conv_kernel(x_ref, gsoT_ref, gso2T_ref, wT_ref, b_ref,
                            o_ref, xk_ref):
    """Batched Chebyshev graph convolution + bias + residual.

    x_ref    : (TBT*C, N)  input rows (also the residual); row = t*C + channel
    gsoT_ref : (N, N)      gso^T            (X @ gso^T == gso @ X per slice)
    gso2T_ref: (N, N)      (2*gso)^T        (Chebyshev 2x folded in)
    wT_ref   : (Ks, C, C)  wT_ref[k] = weight[k].T  (c_out, c_in)
    b_ref    : (C, 1)      bias column (broadcasts along node lanes), f32
    o_ref    : (TBT*C, N)  output block, f32
    xk_ref   : ((Ks-1)*TBT*C, N) VMEM scratch holding X_1 .. X_{Ks-1}
    """
    Ks, C, _ = wT_ref.shape
    R, N = x_ref.shape                  # R = TBT * C
    TBT = R // C
    cdt = x_ref.dtype                   # MXU operand dtype (bf16 fast / f32 exact)

    # ---- Phase 1: Chebyshev recursion, batched over all TBT slices --------
    # One (TBT*C, N) @ (N, N) MXU matmul per order; full-slab aligned stores.
    if Ks >= 2:
        x1 = jnp.dot(x_ref[...], gsoT_ref[...],
                     preferred_element_type=jnp.float32)
        xk_ref[0:R, :] = x1.astype(cdt)
        for k in range(2, Ks):
            prev = xk_ref[(k - 2) * R:(k - 1) * R, :]            # X_{k-1}
            xk = jnp.dot(prev, gso2T_ref[...],
                         preferred_element_type=jnp.float32)
            if k == 2:
                xk = xk - x_ref[...].astype(jnp.float32)         # - X_0
            else:
                xk = xk - xk_ref[(k - 3) * R:(k - 2) * R, :].astype(jnp.float32)
            xk_ref[(k - 1) * R:k * R, :] = xk.astype(cdt)

    # ---- Phase 2: feature contraction + bias + residual, per slice --------
    # Row slices are sublane-aligned (offsets are multiples of C); matmuls of
    # different t are independent, so consecutive MXU pushes do not sit on the
    # recursion's serial chain.
    w_list = [wT_ref[k] for k in range(Ks)]      # each (C, C), hoisted once
    b = b_ref[...]                               # (C, 1) f32
    for t in range(TBT):
        r0 = t * C
        x0_t = x_ref[r0:r0 + C, :]                               # (C, N)
        acc = jnp.dot(w_list[0], x0_t, preferred_element_type=jnp.float32)
        for k in range(1, Ks):
            xk_t = xk_ref[(k - 1) * R + r0:(k - 1) * R + r0 + C, :]
            acc = acc + jnp.dot(w_list[k], xk_t,
                                preferred_element_type=jnp.float32)
        acc = acc + b + x0_t.astype(jnp.float32)   # bias + GraphConvLayer residual
        o_ref[r0:r0 + C, :] = acc.astype(o_ref.dtype)


# ----------------------------------------------------------------------------
# Tiling helpers (generation-aware)
# ----------------------------------------------------------------------------
def _vmem_capacity_bytes():
    """VMEM capacity of the current chip; conservative 64 MiB fallback
    (legal on every generation, incl. v7x's 64 MiB per TensorCore)."""
    try:
        info = pltpu.get_tpu_info()
        for attr in ("vmem_capacity_bytes", "vmem_size_bytes", "vmem_bytes"):
            v = getattr(info, attr, None)
            if v:
                return int(v)
    except Exception:
        pass
    return 64 << 20


def _pick_tbt(BT, C, N, Ks, itemsize, block_budget, max_tbt=16):
    """Largest per-step (batch,time) slice count TBT such that:
       * TBT divides B*T,
       * the block's row count TBT*C is sublane-tile aligned (8 for f32,
         16 for bf16) or the block covers the full array,
       * the per-block VMEM working set fits the budget,
       * the grid stays >= 2 when possible (megacore sharding on 2-TC chips),
       * TBT <= max_tbt (bound for the statically unrolled contraction loop).
    """
    sub = 8 * max(1, 4 // itemsize)        # 8 rows for f32, 16 for bf16
    feasible = []
    for tbt in range(1, BT + 1):
        if BT % tbt or tbt > max_tbt:
            continue
        rows = tbt * C
        if rows % sub != 0 and tbt != BT:
            continue
        blk = (2 * rows * N * itemsize          # input block, double-buffered
               + 2 * rows * N * 4               # f32 output block, double-buffered
               + max(Ks - 1, 1) * rows * N * itemsize)   # Chebyshev scratch
        if blk > block_budget:
            continue
        feasible.append(tbt)
    if not feasible:
        for tbt in range(1, BT + 1):            # smallest legal tile, ignore budget
            if BT % tbt == 0 and ((tbt * C) % sub == 0 or tbt == BT):
                return tbt
        return BT
    multi = [t for t in feasible if BT // t >= 2]
    return max(multi) if multi else max(feasible)


# ----------------------------------------------------------------------------
# Wrapper
# ----------------------------------------------------------------------------
def graph_conv_layer_forward(x, gso, weight, bias, Ks, c_out,
                             align_w=None, align_b=None,
                             compute_dtype=jnp.bfloat16):
    """Forward of GraphConvLayer('cheb_graph_conv', c_in, c_out, Ks, gso, bias).

    x: (B, c_in, T, N) float32 (NCHW).  Returns (B, c_out, T, N).
    """
    B, c_in, T, N = x.shape
    out_dtype = x.dtype

    # ---- Align (channel match), plain JAX glue ----
    # TODO(synk): the c_in > c_out Align 1x1 conv stays in plain JAX (simple
    # per-pixel channel matmul glue; not exercised by the test below).
    if c_in > c_out:
        x_gc_in = (jnp.einsum("bcth,oc->both", x, align_w)
                   + align_b[None, :, None, None])
    elif c_in < c_out:
        pad = jnp.zeros((B, c_out - c_in, T, N), x.dtype)
        x_gc_in = jnp.concatenate([x, pad], axis=1)
    else:
        x_gc_in = x                                      # (B, c_out, T, N)

    if bias is None:
        bias = jnp.zeros((c_out,), jnp.float32)

    C = c_out
    BT = B * T
    # (B, C, T, N) -> (B, T, C, N) -> (BT*C, N): rows = (bt, channel), lanes = node.
    x2 = jnp.transpose(x_gc_in, (0, 2, 1, 3)).reshape(BT * C, N).astype(compute_dtype)
    gsoT = jnp.transpose(gso).astype(compute_dtype)                 # (N, N)
    gso2T = (2.0 * jnp.transpose(gso)).astype(compute_dtype)        # 2x folded in
    wT = jnp.transpose(weight, (0, 2, 1)).astype(compute_dtype)     # (Ks, C, C)
    b2 = bias.reshape(C, 1).astype(jnp.float32)

    itemsize = jnp.dtype(compute_dtype).itemsize
    cap = _vmem_capacity_bytes()
    block_budget = cap // 4                       # ~32 MiB on 128 MiB parts, 16 MiB on v7x
    TBT = _pick_tbt(BT, C, N, Ks, itemsize, block_budget)
    R = TBT * C
    grid = (BT // TBT,)

    blk_bytes = (2 * R * N * itemsize + 2 * R * N * 4
                 + max(Ks - 1, 1) * R * N * itemsize)
    small = 2 * (2 * N * N + Ks * C * C) * itemsize + 8 * C
    vmem_limit = int(min(max(32 << 20, 2 * blk_bytes + small + (8 << 20)),
                         (3 * cap) // 4))

    flops = BT * ((Ks - 1) * 2 * N * N * C + Ks * 2 * N * C * C)
    bytes_accessed = (itemsize * BT * C * N + 4 * BT * C * N
                      + itemsize * (2 * N * N + Ks * C * C) + 4 * C)

    out2 = pl.pallas_call(
        _cheb_graph_conv_kernel,
        out_shape=jax.ShapeDtypeStruct((BT * C, N), jnp.float32),
        grid_spec=pltpu.PrefetchScalarGridSpec(
            num_scalar_prefetch=0,
            grid=grid,
            in_specs=[
                pl.BlockSpec((R, N), lambda i: (i, 0)),          # x (and residual)
                pl.BlockSpec((N, N), lambda i: (0, 0)),          # gso^T
                pl.BlockSpec((N, N), lambda i: (0, 0)),          # (2*gso)^T
                pl.BlockSpec((Ks, C, C), lambda i: (0, 0, 0)),   # weight^T per k
                pl.BlockSpec((C, 1), lambda i: (0, 0)),          # bias column
            ],
            out_specs=pl.BlockSpec((R, N), lambda i: (i, 0)),
            scratch_shapes=[
                pltpu.VMEM((max(Ks - 1, 1) * R, N), compute_dtype)],
        ),
        compiler_params=pltpu.CompilerParams(
            dimension_semantics=("parallel",),
            vmem_limit_bytes=vmem_limit),
        cost_estimate=pl.CostEstimate(flops=flops, transcendentals=0,
                                      bytes_accessed=bytes_accessed),
    )(x2, gsoT, gso2T, wT, b2)

    out = out2.reshape(B, T, C, N)
    return jnp.transpose(out, (0, 2, 1, 3)).astype(out_dtype)      # (B, c_out, T, N)


# ----------------------------------------------------------------------------
# References
# ----------------------------------------------------------------------------
def _reference_forward(x, gso, weight, bias, Ks, c_out):
    """Pure-f32 JAX reference mirroring the PyTorch forward (c_in <= c_out)."""
    B, c_in, T, N = x.shape
    if c_in < c_out:
        x = jnp.concatenate(
            [x, jnp.zeros((B, c_out - c_in, T, N), x.dtype)], axis=1)
    x_gc_in = x
    xp = jnp.transpose(x_gc_in, (0, 2, 3, 1))               # (B, T, N, C)
    x_list = [xp]
    if Ks >= 2:
        x_list.append(jnp.einsum("hi,btij->bthj", gso, xp))
    for k in range(2, Ks):
        x_list.append(jnp.einsum("hi,btij->bthj", 2.0 * gso, x_list[k - 1])
                      - x_list[k - 2])
    xs = jnp.stack(x_list, axis=2)                          # (B, T, Ks, N, C)
    gc = jnp.einsum("btkhi,kij->bthj", xs, weight) + bias   # (B, T, N, Cout)
    return jnp.transpose(gc, (0, 3, 1, 2)) + x_gc_in


def _matched_reference(x, gso, weight, bias, Ks, c_out, compute_dtype):
    """Plain-JAX mirror of the kernel's math AND precision choices (bf16 MXU
    operands, f32 accumulation) for a tight structural check."""
    B, c_in, T, N = x.shape
    if c_in < c_out:
        x = jnp.concatenate(
            [x, jnp.zeros((B, c_out - c_in, T, N), x.dtype)], axis=1)
    C = c_out
    BT = B * T
    x2 = jnp.transpose(x, (0, 2, 1, 3)).reshape(BT * C, N).astype(compute_dtype)
    gsoT = jnp.transpose(gso).astype(compute_dtype)
    gso2T = (2.0 * jnp.transpose(gso)).astype(compute_dtype)
    wT = jnp.transpose(weight, (0, 2, 1)).astype(compute_dtype)      # (Ks, C, C)
    b2 = bias.reshape(1, C, 1).astype(jnp.float32)

    xs = [x2]
    if Ks >= 2:
        xs.append(jnp.dot(x2, gsoT, preferred_element_type=jnp.float32)
                  .astype(compute_dtype))
    for k in range(2, Ks):
        xk = (jnp.dot(xs[k - 1], gso2T, preferred_element_type=jnp.float32)
              - xs[k - 2].astype(jnp.float32)).astype(compute_dtype)
        xs.append(xk)

    xk3 = jnp.stack([v.reshape(BT, C, N) for v in xs], axis=1)       # (BT,Ks,C,N)
    gc = jnp.einsum("kji,bkin->bjn", wT, xk3,
                    preferred_element_type=jnp.float32)              # (BT, C, N)
    out2 = gc + b2 + x2.reshape(BT, C, N).astype(jnp.float32)
    out = out2.reshape(B, T, C, N)
    return jnp.transpose(out, (0, 2, 1, 3))


# ----------------------------------------------------------------------------
# Self-test
# ----------------------------------------------------------------------------
if __name__ == "__main__":
    # Small, module-consistent shapes.
    B, c_in, c_out, T, N, Ks = 2, 4, 8, 8, 16, 3

    key = jax.random.PRNGKey(0)
    k_x, k_g, k_w, k_b = jax.random.split(key, 4)

    x = jax.random.normal(k_x, (B, c_in, T, N), jnp.float32)

    # Deterministic symmetric "normalized graph shift operator".
    a = jax.random.uniform(k_g, (N, N), jnp.float32)
    gso = (a + a.T) / (2.0 * N)

    # ChebGraphConv(c_out, c_out, Ks) params, kaiming-uniform-style bounds.
    fan_in = c_out * c_out
    w_bound = 1.0 / math.sqrt(c_out)
    weight = jax.random.uniform(k_w, (Ks, c_out, c_out), jnp.float32,
                                minval=-w_bound, maxval=w_bound)
    b_bound = 1.0 / math.sqrt(fan_in)
    bias = jax.random.uniform(k_b, (c_out,), jnp.float32,
                              minval=-b_bound, maxval=b_bound)

    ref32 = _reference_forward(x, gso, weight, bias, Ks, c_out)

    # Exactness check: f32 MXU operands -> must match the f32 reference tightly.
    out_f32 = graph_conv_layer_forward(x, gso, weight, bias, Ks, c_out,
                                       compute_dtype=jnp.float32)
    out_f32 = jax.block_until_ready(out_f32)
    assert out_f32.shape == (B, c_out, T, N)
    assert jnp.allclose(out_f32, ref32, atol=1e-4, rtol=1e-4), \
        "f32 kernel mismatch vs reference"

    # Fast path: bf16 MXU operands, f32 accumulation.
    out = graph_conv_layer_forward(x, gso, weight, bias, Ks, c_out,
                                   compute_dtype=jnp.bfloat16)
    out = jax.block_until_ready(out)
    assert out.shape == (B, c_out, T, N)
    # Structural check against a precision-matched JAX mirror (tight).
    ref_bf16 = _matched_reference(x, gso, weight, bias, Ks, c_out, jnp.bfloat16)
    assert jnp.allclose(out, ref_bf16, atol=5e-3, rtol=5e-3), \
        "bf16 kernel mismatch vs precision-matched reference"
    # Fidelity check against the pure-f32 reference (loose, bf16 rounding).
    assert jnp.allclose(out, ref32, atol=1e-1, rtol=5e-2), \
        "bf16 kernel drifted too far from f32 reference"

    print("KERNEL_OK")
</pallas_src>

<mosaic_0001>
module attributes {stable_mosaic.version = 11 : i64} {
  func.func @_cheb_graph_conv_kernel(%arg0: i32, %arg1: memref<64x16xf32, #tpu.memory_space<vmem>>, %arg2: memref<16x16xf32, #tpu.memory_space<vmem>>, %arg3: memref<16x16xf32, #tpu.memory_space<vmem>>, %arg4: memref<3x8x8xf32, #tpu.memory_space<vmem>>, %arg5: memref<8x1xf32, #tpu.memory_space<vmem>>, %arg6: memref<64x16xf32, #tpu.memory_space<vmem>>, %arg7: memref<128x16xf32, #tpu.memory_space<vmem>>) attributes {dimension_semantics = [#tpu.dimension_semantics<parallel>], iteration_bounds = array<i64: 2>, scalar_prefetch = 0 : i64, scratch_operands = 1 : i64, tpu.core_type = #tpu.core_type<tc>, window_params = [{transform_indices = @transform_0, window_bounds = array<i64: 64, 16>}, {pipeline_mode = #tpu.pipeline_mode<synchronous>, transform_indices = @transform_1, window_bounds = array<i64: 16, 16>}, {pipeline_mode = #tpu.pipeline_mode<synchronous>, transform_indices = @transform_2, window_bounds = array<i64: 16, 16>}, {pipeline_mode = #tpu.pipeline_mode<synchronous>, transform_indices = @transform_3, window_bounds = array<i64: 3, 8, 8>}, {pipeline_mode = #tpu.pipeline_mode<synchronous>, transform_indices = @transform_4, window_bounds = array<i64: 8, 1>}, {transform_indices = @transform_5, window_bounds = array<i64: 64, 16>}]} {
    %c0 = arith.constant 0 : index
    %c0_0 = arith.constant 0 : index
    %0 = vector.load %arg1[%c0, %c0_0] : memref<64x16xf32, #tpu.memory_space<vmem>>, vector<64x16xf32>
    %c0_1 = arith.constant 0 : index
    %c0_2 = arith.constant 0 : index
    %1 = vector.load %arg2[%c0_1, %c0_2] : memref<16x16xf32, #tpu.memory_space<vmem>>, vector<16x16xf32>
    %cst = arith.constant dense<0.000000e+00> : vector<64x16xf32>
    %2 = tpu.matmul %0, %1, %cst {dimension_numbers = #tpu.dot_dimension_numbers<[1], [0], [0], [1], [0, 0, 1, 1], [], []>} : vector<64x16xf32>, vector<16x16xf32>, vector<64x16xf32> -> vector<64x16xf32>
    %c0_3 = arith.constant 0 : index
    %c0_4 = arith.constant 0 : index
    %3 = vector.load %arg7[%c0_3, %c0_4] : memref<128x16xf32, #tpu.memory_space<vmem>>, vector<64x16xf32>
    tpu.vector_store %arg7[%c0_3, %c0_4], %2 {strides = array<i32>} : memref<128x16xf32, #tpu.memory_space<vmem>>, vector<64x16xf32>,
    %c0_5 = arith.constant 0 : index
    %c0_6 = arith.constant 0 : index
    %4 = vector.load %arg7[%c0_5, %c0_6] : memref<128x16xf32, #tpu.memory_space<vmem>>, vector<64x16xf32>
    %c0_7 = arith.constant 0 : index
    %c0_8 = arith.constant 0 : index
    %5 = vector.load %arg3[%c0_7, %c0_8] : memref<16x16xf32, #tpu.memory_space<vmem>>, vector<16x16xf32>
    %cst_9 = arith.constant dense<0.000000e+00> : vector<64x16xf32>
    %6 = tpu.matmul %4, %5, %cst_9 {dimension_numbers = #tpu.dot_dimension_numbers<[1], [0], [0], [1], [0, 0, 1, 1], [], []>} : vector<64x16xf32>, vector<16x16xf32>, vector<64x16xf32> -> vector<64x16xf32>
    %c0_10 = arith.constant 0 : index
    %c0_11 = arith.constant 0 : index
    %7 = vector.load %arg1[%c0_10, %c0_11] : memref<64x16xf32, #tpu.memory_space<vmem>>, vector<64x16xf32>
    %8 = arith.subf %6, %7 : vector<64x16xf32>
    %c64 = arith.constant 64 : index
    %c0_12 = arith.constant 0 : index
    %9 = vector.load %arg7[%c64, %c0_12] : memref<128x16xf32, #tpu.memory_space<vmem>>, vector<64x16xf32>
    tpu.vector_store %arg7[%c64, %c0_12], %8 {strides = array<i32>} : memref<128x16xf32, #tpu.memory_space<vmem>>, vector<64x16xf32>,
    %c0_13 = arith.constant 0 : index
    %c0_14 = arith.constant 0 : index
    %c0_15 = arith.constant 0 : index
    %10 = vector.load %arg4[%c0_13, %c0_14, %c0_15] : memref<3x8x8xf32, #tpu.memory_space<vmem>>, vector<1x8x8xf32>
    %11 = vector.shape_cast %10 : vector<1x8x8xf32> to vector<8x8xf32>
    %c1 = arith.constant 1 : index
    %c0_16 = arith.constant 0 : index
    %c0_17 = arith.constant 0 : index
    %12 = vector.load %arg4[%c1, %c0_16, %c0_17] : memref<3x8x8xf32, #tpu.memory_space<vmem>>, vector<1x8x8xf32>
    %13 = vector.shape_cast %12 : vector<1x8x8xf32> to vector<8x8xf32>
    %c2 = arith.constant 2 : index
    %c0_18 = arith.constant 0 : index
    %c0_19 = arith.constant 0 : index
    %14 = vector.load %arg4[%c2, %c0_18, %c0_19] : memref<3x8x8xf32, #tpu.memory_space<vmem>>, vector<1x8x8xf32>
    %15 = vector.shape_cast %14 : vector<1x8x8xf32> to vector<8x8xf32>
    %c0_20 = arith.constant 0 : index
    %c0_21 = arith.constant 0 : index
    %16 = vector.load %arg5[%c0_20, %c0_21] : memref<8x1xf32, #tpu.memory_space<vmem>>, vector<8x1xf32>
    %c0_22 = arith.constant 0 : index
    %c0_23 = arith.constant 0 : index
    %17 = vector.load %arg1[%c0_22, %c0_23] : memref<64x16xf32, #tpu.memory_space<vmem>>, vector<8x16xf32>
    %cst_24 = arith.constant dense<0.000000e+00> : vector<8x16xf32>
    %18 = tpu.matmul %11, %17, %cst_24 {dimension_numbers = #tpu.dot_dimension_numbers<[1], [0], [0], [1], [0, 0, 1, 1], [], []>} : vector<8x8xf32>, vector<8x16xf32>, vector<8x16xf32> -> vector<8x16xf32>
    %c0_25 = arith.constant 0 : index
    %c0_26 = arith.constant 0 : index
    %19 = vector.load %arg7[%c0_25, %c0_26] : memref<128x16xf32, #tpu.memory_space<vmem>>, vector<8x16xf32>
    %cst_27 = arith.constant dense<0.000000e+00> : vector<8x16xf32>
    %20 = tpu.matmul %13, %19, %cst_27 {dimension_numbers = #tpu.dot_dimension_numbers<[1], [0], [0], [1], [0, 0, 1, 1], [], []>} : vector<8x8xf32>, vector<8x16xf32>, vector<8x16xf32> -> vector<8x16xf32>
    %21 = arith.addf %18, %20 : vector<8x16xf32>
    %c64_28 = arith.constant 64 : index
    %c0_29 = arith.constant 0 : index
    %22 = vector.load %arg7[%c64_28, %c0_29] : memref<128x16xf32, #tpu.memory_space<vmem>>, vector<8x16xf32>
    %cst_30 = arith.constant dense<0.000000e+00> : vector<8x16xf32>
    %23 = tpu.matmul %15, %22, %cst_30 {dimension_numbers = #tpu.dot_dimension_numbers<[1], [0], [0], [1], [0, 0, 1, 1], [], []>} : vector<8x8xf32>, vector<8x16xf32>, vector<8x16xf32> -> vector<8x16xf32>
    %24 = arith.addf %21, %23 : vector<8x16xf32>
    %25 = vector.broadcast %16 : vector<8x1xf32> to vector<8x16xf32>
    %26 = arith.addf %24, %25 : vector<8x16xf32>
    %27 = arith.addf %26, %17 : vector<8x16xf32>
    %c0_31 = arith.constant 0 : index
    %c0_32 = arith.constant 0 : index
    %28 = vector.load %arg6[%c0_31, %c0_32] : memref<64x16xf32, #tpu.memory_space<vmem>>, vector<8x16xf32>
    tpu.vector_store %arg6[%c0_31, %c0_32], %27 {strides = array<i32>} : memref<64x16xf32, #tpu.memory_space<vmem>>, vector<8x16xf32>,
    %c8 = arith.constant 8 : index
    %c0_33 = arith.constant 0 : index
    %29 = vector.load %arg1[%c8, %c0_33] : memref<64x16xf32, #tpu.memory_space<vmem>>, vector<8x16xf32>
    %cst_34 = arith.constant dense<0.000000e+00> : vector<8x16xf32>
    %30 = tpu.matmul %11, %29, %cst_34 {dimension_numbers = #tpu.dot_dimension_numbers<[1], [0], [0], [1], [0, 0, 1, 1], [], []>} : vector<8x8xf32>, vector<8x16xf32>, vector<8x16xf32> -> vector<8x16xf32>
    %c8_35 = arith.constant 8 : index
    %c0_36 = arith.constant 0 : index
    %31 = vector.load %arg7[%c8_35, %c0_36] : memref<128x16xf32, #tpu.memory_space<vmem>>, vector<8x16xf32>
    %cst_37 = arith.constant dense<0.000000e+00> : vector<8x16xf32>
    %32 = tpu.matmul %13, %31, %cst_37 {dimension_numbers = #tpu.dot_dimension_numbers<[1], [0], [0], [1], [0, 0, 1, 1], [], []>} : vector<8x8xf32>, vector<8x16xf32>, vector<8x16xf32> -> vector<8x16xf32>
    %33 = arith.addf %30, %32 : vector<8x16xf32>
    %c72 = arith.constant 72 : index
    %c0_38 = arith.constant 0 : index
    %34 = vector.load %arg7[%c72, %c0_38] : memref<128x16xf32, #tpu.memory_space<vmem>>, vector<8x16xf32>
    %cst_39 = arith.constant dense<0.000000e+00> : vector<8x16xf32>
    %35 = tpu.matmul %15, %34, %cst_39 {dimension_numbers = #tpu.dot_dimension_numbers<[1], [0], [0], [1], [0, 0, 1, 1], [], []>} : vector<8x8xf32>, vector<8x16xf32>, vector<8x16xf32> -> vector<8x16xf32>
    %36 = arith.addf %33, %35 : vector<8x16xf32>
    %37 = vector.broadcast %16 : vector<8x1xf32> to vector<8x16xf32>
    %38 = arith.addf %36, %37 : vector<8x16xf32>
    %39 = arith.addf %38, %29 : vector<8x16xf32>
    %c8_40 = arith.constant 8 : index
    %c0_41 = arith.constant 0 : index
    %40 = vector.load %arg6[%c8_40, %c0_41] : memref<64x16xf32, #tpu.memory_space<vmem>>, vector<8x16xf32>
    tpu.vector_store %arg6[%c8_40, %c0_41], %39 {strides = array<i32>} : memref<64x16xf32, #tpu.memory_space<vmem>>, vector<8x16xf32>,
    %c16 = arith.constant 16 : index
    %c0_42 = arith.constant 0 : index
    %41 = vector.load %arg1[%c16, %c0_42] : memref<64x16xf32, #tpu.memory_space<vmem>>, vector<8x16xf32>
    %cst_43 = arith.constant dense<0.000000e+00> : vector<8x16xf32>
    %42 = tpu.matmul %11, %41, %cst_43 {dimension_numbers = #tpu.dot_dimension_numbers<[1], [0], [0], [1], [0, 0, 1, 1], [], []>} : vector<8x8xf32>, vector<8x16xf32>, vector<8x16xf32> -> vector<8x16xf32>
    %c16_44 = arith.constant 16 : index
    %c0_45 = arith.constant 0 : index
    %43 = vector.load %arg7[%c16_44, %c0_45] : memref<128x16xf32, #tpu.memory_space<vmem>>, vector<8x16xf32>
    %cst_46 = arith.constant dense<0.000000e+00> : vector<8x16xf32>
    %44 = tpu.matmul %13, %43, %cst_46 {dimension_numbers = #tpu.dot_dimension_numbers<[1], [0], [0], [1], [0, 0, 1, 1], [], []>} : vector<8x8xf32>, vector<8x16xf32>, vector<8x16xf32> -> vector<8x16xf32>
    %45 = arith.addf %42, %44 : vector<8x16xf32>
    %c80 = arith.constant 80 : index
    %c0_47 = arith.constant 0 : index
    %46 = vector.load %arg7[%c80, %c0_47] : memref<128x16xf32, #tpu.memory_space<vmem>>, vector<8x16xf32>
    %cst_48 = arith.constant dense<0.000000e+00> : vector<8x16xf32>
    %47 = tpu.matmul %15, %46, %cst_48 {dimension_numbers = #tpu.dot_dimension_numbers<[1], [0], [0], [1], [0, 0, 1, 1], [], []>} : vector<8x8xf32>, vector<8x16xf32>, vector<8x16xf32> -> vector<8x16xf32>
    %48 = arith.addf %45, %47 : vector<8x16xf32>
    %49 = vector.broadcast %16 : vector<8x1xf32> to vector<8x16xf32>
    %50 = arith.addf %48, %49 : vector<8x16xf32>
    %51 = arith.addf %50, %41 : vector<8x16xf32>
    %c16_49 = arith.constant 16 : index
    %c0_50 = arith.constant 0 : index
    %52 = vector.load %arg6[%c16_49, %c0_50] : memref<64x16xf32, #tpu.memory_space<vmem>>, vector<8x16xf32>
    tpu.vector_store %arg6[%c16_49, %c0_50], %51 {strides = array<i32>} : memref<64x16xf32, #tpu.memory_space<vmem>>, vector<8x16xf32>,
    %c24 = arith.constant 24 : index
    %c0_51 = arith.constant 0 : index
    %53 = vector.load %arg1[%c24, %c0_51] : memref<64x16xf32, #tpu.memory_space<vmem>>, vector<8x16xf32>
    %cst_52 = arith.constant dense<0.000000e+00> : vector<8x16xf32>
    %54 = tpu.matmul %11, %53, %cst_52 {dimension_numbers = #tpu.dot_dimension_numbers<[1], [0], [0], [1], [0, 0, 1, 1], [], []>} : vector<8x8xf32>, vector<8x16xf32>, vector<8x16xf32> -> vector<8x16xf32>
    %c24_53 = arith.constant 24 : index
    %c0_54 = arith.constant 0 : index
    %55 = vector.load %arg7[%c24_53, %c0_54] : memref<128x16xf32, #tpu.memory_space<vmem>>, vector<8x16xf32>
    %cst_55 = arith.constant dense<0.000000e+00> : vector<8x16xf32>
    %56 = tpu.matmul %13, %55, %cst_55 {dimension_numbers = #tpu.dot_dimension_numbers<[1], [0], [0], [1], [0, 0, 1, 1], [], []>} : vector<8x8xf32>, vector<8x16xf32>, vector<8x16xf32> -> vector<8x16xf32>
    %57 = arith.addf %54, %56 : vector<8x16xf32>
    %c88 = arith.constant 88 : index
    %c0_56 = arith.constant 0 : index
    %58 = vector.load %arg7[%c88, %c0_56] : memref<128x16xf32, #tpu.memory_space<vmem>>, vector<8x16xf32>
    %cst_57 = arith.constant dense<0.000000e+00> : vector<8x16xf32>
    %59 = tpu.matmul %15, %58, %cst_57 {dimension_numbers = #tpu.dot_dimension_numbers<[1], [0], [0], [1], [0, 0, 1, 1], [], []>} : vector<8x8xf32>, vector<8x16xf32>, vector<8x16xf32> -> vector<8x16xf32>
    %60 = arith.addf %57, %59 : vector<8x16xf32>
    %61 = vector.broadcast %16 : vector<8x1xf32> to vector<8x16xf32>
    %62 = arith.addf %60, %61 : vector<8x16xf32>
    %63 = arith.addf %62, %53 : vector<8x16xf32>
    %c24_58 = arith.constant 24 : index
    %c0_59 = arith.constant 0 : index
    %64 = vector.load %arg6[%c24_58, %c0_59] : memref<64x16xf32, #tpu.memory_space<vmem>>, vector<8x16xf32>
    tpu.vector_store %arg6[%c24_58, %c0_59], %63 {strides = array<i32>} : memref<64x16xf32, #tpu.memory_space<vmem>>, vector<8x16xf32>,
    %c32 = arith.constant 32 : index
    %c0_60 = arith.constant 0 : index
    %65 = vector.load %arg1[%c32, %c0_60] : memref<64x16xf32, #tpu.memory_space<vmem>>, vector<8x16xf32>
    %cst_61 = arith.constant dense<0.000000e+00> : vector<8x16xf32>
    %66 = tpu.matmul %11, %65, %cst_61 {dimension_numbers = #tpu.dot_dimension_numbers<[1], [0], [0], [1], [0, 0, 1, 1], [], []>} : vector<8x8xf32>, vector<8x16xf32>, vector<8x16xf32> -> vector<8x16xf32>
    %c32_62 = arith.constant 32 : index
    %c0_63 = arith.constant 0 : index
    %67 = vector.load %arg7[%c32_62, %c0_63] : memref<128x16xf32, #tpu.memory_space<vmem>>, vector<8x16xf32>
    %cst_64 = arith.constant dense<0.000000e+00> : vector<8x16xf32>
    %68 = tpu.matmul %13, %67, %cst_64 {dimension_numbers = #tpu.dot_dimension_numbers<[1], [0], [0], [1], [0, 0, 1, 1], [], []>} : vector<8x8xf32>, vector<8x16xf32>, vector<8x16xf32> -> vector<8x16xf32>
    %69 = arith.addf %66, %68 : vector<8x16xf32>
    %c96 = arith.constant 96 : index
    %c0_65 = arith.constant 0 : index
    %70 = vector.load %arg7[%c96, %c0_65] : memref<128x16xf32, #tpu.memory_space<vmem>>, vector<8x16xf32>
    %cst_66 = arith.constant dense<0.000000e+00> : vector<8x16xf32>
    %71 = tpu.matmul %15, %70, %cst_66 {dimension_numbers = #tpu.dot_dimension_numbers<[1], [0], [0], [1], [0, 0, 1, 1], [], []>} : vector<8x8xf32>, vector<8x16xf32>, vector<8x16xf32> -> vector<8x16xf32>
    %72 = arith.addf %69, %71 : vector<8x16xf32>
    %73 = vector.broadcast %16 : vector<8x1xf32> to vector<8x16xf32>
    %74 = arith.addf %72, %73 : vector<8x16xf32>
    %75 = arith.addf %74, %65 : vector<8x16xf32>
    %c32_67 = arith.constant 32 : index
    %c0_68 = arith.constant 0 : index
    %76 = vector.load %arg6[%c32_67, %c0_68] : memref<64x16xf32, #tpu.memory_space<vmem>>, vector<8x16xf32>
    tpu.vector_store %arg6[%c32_67, %c0_68], %75 {strides = array<i32>} : memref<64x16xf32, #tpu.memory_space<vmem>>, vector<8x16xf32>,
    %c40 = arith.constant 40 : index
    %c0_69 = arith.constant 0 : index
    %77 = vector.load %arg1[%c40, %c0_69] : memref<64x16xf32, #tpu.memory_space<vmem>>, vector<8x16xf32>
    %cst_70 = arith.constant dense<0.000000e+00> : vector<8x16xf32>
    %78 = tpu.matmul %11, %77, %cst_70 {dimension_numbers = #tpu.dot_dimension_numbers<[1], [0], [0], [1], [0, 0, 1, 1], [], []>} : vector<8x8xf32>, vector<8x16xf32>, vector<8x16xf32> -> vector<8x16xf32>
    %c40_71 = arith.constant 40 : index
    %c0_72 = arith.constant 0 : index
    %79 = vector.load %arg7[%c40_71, %c0_72] : memref<128x16xf32, #tpu.memory_space<vmem>>, vector<8x16xf32>
    %cst_73 = arith.constant dense<0.000000e+00> : vector<8x16xf32>
    %80 = tpu.matmul %13, %79, %cst_73 {dimension_numbers = #tpu.dot_dimension_numbers<[1], [0], [0], [1], [0, 0, 1, 1], [], []>} : vector<8x8xf32>, vector<8x16xf32>, vector<8x16xf32> -> vector<8x16xf32>
    %81 = arith.addf %78, %80 : vector<8x16xf32>
    %c104 = arith.constant 104 : index
    %c0_74 = arith.constant 0 : index
    %82 = vector.load %arg7[%c104, %c0_74] : memref<128x16xf32, #tpu.memory_space<vmem>>, vector<8x16xf32>
    %cst_75 = arith.constant dense<0.000000e+00> : vector<8x16xf32>
    %83 = tpu.matmul %15, %82, %cst_75 {dimension_numbers = #tpu.dot_dimension_numbers<[1], [0], [0], [1], [0, 0, 1, 1], [], []>} : vector<8x8xf32>, vector<8x16xf32>, vector<8x16xf32> -> vector<8x16xf32>
    %84 = arith.addf %81, %83 : vector<8x16xf32>
    %85 = vector.broadcast %16 : vector<8x1xf32> to vector<8x16xf32>
    %86 = arith.addf %84, %85 : vector<8x16xf32>
    %87 = arith.addf %86, %77 : vector<8x16xf32>
    %c40_76 = arith.constant 40 : index
    %c0_77 = arith.constant 0 : index
    %88 = vector.load %arg6[%c40_76, %c0_77] : memref<64x16xf32, #tpu.memory_space<vmem>>, vector<8x16xf32>
    tpu.vector_store %arg6[%c40_76, %c0_77], %87 {strides = array<i32>} : memref<64x16xf32, #tpu.memory_space<vmem>>, vector<8x16xf32>,
    %c48 = arith.constant 48 : index
    %c0_78 = arith.constant 0 : index
    %89 = vector.load %arg1[%c48, %c0_78] : memref<64x16xf32, #tpu.memory_space<vmem>>, vector<8x16xf32>
    %cst_79 = arith.constant dense<0.000000e+00> : vector<8x16xf32>
    %90 = tpu.matmul %11, %89, %cst_79 {dimension_numbers = #tpu.dot_dimension_numbers<[1], [0], [0], [1], [0, 0, 1, 1], [], []>} : vector<8x8xf32>, vector<8x16xf32>, vector<8x16xf32> -> vector<8x16xf32>
    %c48_80 = arith.constant 48 : index
    %c0_81 = arith.constant 0 : index
    %91 = vector.load %arg7[%c48_80, %c0_81] : memref<128x16xf32, #tpu.memory_space<vmem>>, vector<8x16xf32>
    %cst_82 = arith.constant dense<0.000000e+00> : vector<8x16xf32>
    %92 = tpu.matmul %13, %91, %cst_82 {dimension_numbers = #tpu.dot_dimension_numbers<[1], [0], [0], [1], [0, 0, 1, 1], [], []>} : vector<8x8xf32>, vector<8x16xf32>, vector<8x16xf32> -> vector<8x16xf32>
    %93 = arith.addf %90, %92 : vector<8x16xf32>
    %c112 = arith.constant 112 : index
    %c0_83 = arith.constant 0 : index
    %94 = vector.load %arg7[%c112, %c0_83] : memref<128x16xf32, #tpu.memory_space<vmem>>, vector<8x16xf32>
    %cst_84 = arith.constant dense<0.000000e+00> : vector<8x16xf32>
    %95 = tpu.matmul %15, %94, %cst_84 {dimension_numbers = #tpu.dot_dimension_numbers<[1], [0], [0], [1], [0, 0, 1, 1], [], []>} : vector<8x8xf32>, vector<8x16xf32>, vector<8x16xf32> -> vector<8x16xf32>
    %96 = arith.addf %93, %95 : vector<8x16xf32>
    %97 = vector.broadcast %16 : vector<8x1xf32> to vector<8x16xf32>
    %98 = arith.addf %96, %97 : vector<8x16xf32>
    %99 = arith.addf %98, %89 : vector<8x16xf32>
    %c48_85 = arith.constant 48 : index
    %c0_86 = arith.constant 0 : index
    %100 = vector.load %arg6[%c48_85, %c0_86] : memref<64x16xf32, #tpu.memory_space<vmem>>, vector<8x16xf32>
    tpu.vector_store %arg6[%c48_85, %c0_86], %99 {strides = array<i32>} : memref<64x16xf32, #tpu.memory_space<vmem>>, vector<8x16xf32>,
    %c56 = arith.constant 56 : index
    %c0_87 = arith.constant 0 : index
    %101 = vector.load %arg1[%c56, %c0_87] : memref<64x16xf32, #tpu.memory_space<vmem>>, vector<8x16xf32>
    %cst_88 = arith.constant dense<0.000000e+00> : vector<8x16xf32>
    %102 = tpu.matmul %11, %101, %cst_88 {dimension_numbers = #tpu.dot_dimension_numbers<[1], [0], [0], [1], [0, 0, 1, 1], [], []>} : vector<8x8xf32>, vector<8x16xf32>, vector<8x16xf32> -> vector<8x16xf32>
    %c56_89 = arith.constant 56 : index
    %c0_90 = arith.constant 0 : index
    %103 = vector.load %arg7[%c56_89, %c0_90] : memref<128x16xf32, #tpu.memory_space<vmem>>, vector<8x16xf32>
    %cst_91 = arith.constant dense<0.000000e+00> : vector<8x16xf32>
    %104 = tpu.matmul %13, %103, %cst_91 {dimension_numbers = #tpu.dot_dimension_numbers<[1], [0], [0], [1], [0, 0, 1, 1], [], []>} : vector<8x8xf32>, vector<8x16xf32>, vector<8x16xf32> -> vector<8x16xf32>
    %105 = arith.addf %102, %104 : vector<8x16xf32>
    %c120 = arith.constant 120 : index
    %c0_92 = arith.constant 0 : index
    %106 = vector.load %arg7[%c120, %c0_92] : memref<128x16xf32, #tpu.memory_space<vmem>>, vector<8x16xf32>
    %cst_93 = arith.constant dense<0.000000e+00> : vector<8x16xf32>
    %107 = tpu.matmul %15, %106, %cst_93 {dimension_numbers = #tpu.dot_dimension_numbers<[1], [0], [0], [1], [0, 0, 1, 1], [], []>} : vector<8x8xf32>, vector<8x16xf32>, vector<8x16xf32> -> vector<8x16xf32>
    %108 = arith.addf %105, %107 : vector<8x16xf32>
    %109 = vector.broadcast %16 : vector<8x1xf32> to vector<8x16xf32>
    %110 = arith.addf %108, %109 : vector<8x16xf32>
    %111 = arith.addf %110, %101 : vector<8x16xf32>
    %c56_94 = arith.constant 56 : index
    %c0_95 = arith.constant 0 : index
    %112 = vector.load %arg6[%c56_94, %c0_95] : memref<64x16xf32, #tpu.memory_space<vmem>>, vector<8x16xf32>
    tpu.vector_store %arg6[%c56_94, %c0_95], %111 {strides = array<i32>} : memref<64x16xf32, #tpu.memory_space<vmem>>, vector<8x16xf32>,
    return
  }
  func.func @transform_0(%arg0: i32) -> (i32, i32) {
    %c0_i32 = arith.constant 0 : i32
    %c0_i32_0 = arith.constant 0 : i32
    return %arg0, %c0_i32 : i32, i32
  }
  func.func @transform_1(%arg0: i32) -> (i32, i32) {
    %c0_i32 = arith.constant 0 : i32
    %c0_i32_0 = arith.constant 0 : i32
    %c0_i32_1 = arith.constant 0 : i32
    return %c0_i32, %c0_i32_0 : i32, i32
  }
  func.func @transform_2(%arg0: i32) -> (i32, i32) {
    %c0_i32 = arith.constant 0 : i32
    %c0_i32_0 = arith.constant 0 : i32
    %c0_i32_1 = arith.constant 0 : i32
    return %c0_i32, %c0_i32_0 : i32, i32
  }
  func.func @transform_3(%arg0: i32) -> (i32, i32, i32) {
    %c0_i32 = arith.constant 0 : i32
    %c0_i32_0 = arith.constant 0 : i32
    %c0_i32_1 = arith.constant 0 : i32
    %c0_i32_2 = arith.constant 0 : i32
    return %c0_i32, %c0_i32_0, %c0_i32_1 : i32, i32, i32
  }
  func.func @transform_4(%arg0: i32) -> (i32, i32) {
    %c0_i32 = arith.constant 0 : i32
    %c0_i32_0 = arith.constant 0 : i32
    %c0_i32_1 = arith.constant 0 : i32
    return %c0_i32, %c0_i32_0 : i32, i32
  }
  func.func @transform_5(%arg0: i32) -> (i32, i32) {
    %c0_i32 = arith.constant 0 : i32
    %c0_i32_0 = arith.constant 0 : i32
    return %arg0, %c0_i32 : i32, i32
  }
}

</mosaic_0001>

<bundles_post_ra>
// kernel: tpu_custom_call.1
= control target key start
LH: loop header
LB: loop body
LE: loop exit
PB: predicated region body
PF: predicated region fallthrough
CT: control target
= control target key end

     0   :  { %s1126_s18 = smov 0   ;;  %s1328_s0 = inlined_call_operand.vmem [shape: f32[128,16], index: 0, kind: input, shape index: {}]   ;;  %s1329_s1 = inlined_call_operand.vmem [shape: f32[16,16], index: 1, kind: input, shape index: {}]   ;;  %s1330_s2 = inlined_call_operand.vmem [shape: f32[16,16], index: 2, kind: input, shape index: {}]   ;;  %s1331_s3 = inlined_call_operand.vmem [shape: f32[3,8,8], index: 3, kind: input, shape index: {}]   ;;  %s1332_s4 = inlined_call_operand.vmem [shape: f32[8,1], index: 4, kind: input, shape index: {}]   ;;  %s1333_s5 = inlined_call_operand.vmem [shape: f32[128,16], index: 5, kind: output, shape index: {}]  }
   0x1 LB: > { %s1024_s19 = sadd.s32 4294967295, %s1093_s18   ;;  %p1028_p0 = scmp.ge.s32.totalorder %s1093_s18, 1  ;;  %s1093_s18 = sphi %s1126_s18, %s15_s18  }
   0x2   : > { %p188_p1 = scmp.lt.s32.totalorder %s1093_s18, 3 }
   0x4   : > { %p189_p2 = pnand %p1028_p0, %p188_p1 }
   0x5   : > { %s1029_s24 = sshll.u32 (!%p189_p2), %s1024_s19, 3 }
   0x6   : > { %192 = sbr.rel (%p189_p2) target bundleno = 491 (0x1eb), region = 40  ;;  %p217_p3 = scmp.lt.s32.totalorder (!%p189_p2), %s1029_s24, 15 }
   0xb   : > { %v237_v0 = vld [vmem:[%s1329_s1 + $0x8] sm:$0xff]  ;;  %v236_v1 = vld [vmem:[%s1329_s1] sm:$0xff]  ;;  %s1335_s24 = smov (!%p217_p3, %s1029_s24), 15  ;;  %vm238_vm0 = vcmask 130048   ;;  %vm419_vm1 = vcmask 64512   ;;  %v1095_v31 = vmov 0  }
   0xc   : > { %277 = vmatpush.msra.mxu0 %v237_v0  ;;  %s1030_s25 = sshll.u32 %s1335_s24, 3  ;;  %v321_v10 = vld [vmem:[%s1330_s2 + $0x8] sm:$0xff]  ;;  %v320_v11 = vld [vmem:[%s1330_s2] sm:$0xff]  ;;  %1086 = vset.pattern.permute.xlu0 %v1095_v31  ;;  %v1050_v36 = vld [vmem:[%s1331_s3 + $0x10] sm:$0xff] }
   0xd   : > { %s220_s28 = scalar_lea.vmem %s1328_s0, %s1030_s25  ;;  %360 = vmatpush.msra.mxu1 %v321_v10  ;;  %v1217_v28 = vld [vmem:[%s1331_s3 + $0x8] sm:$0xff]  ;;  %v1222_v29 = vld [vmem:[%s1331_s3] sm:$0xff]  ;;  %s1299_s19 = scalar_lea.vmem %s1333_s5, %s1030_s25 }
   0xe   : > { %278 = vmatpush.msra.mxu0 %v236_v1  ;;  %v1148_v2 = vld [vmem:[%s220_s28] sm:$0xff]  ;;  %v1153_v3 = vld [vmem:[%s220_s28 + $0x8] sm:$0xff]  ;;  %v1157_v4 = vld [vmem:[%s220_s28 + $0x10] sm:$0xff] }
   0xf   : > { %1033 = vmatmul.msk.f32.vlgmr.msra.gmra.mxu0 %vm238_vm0, %v1148_v2  ;;  %461 = vmatpush.msra.mxu3 %v1148_v2  ;;  %v1161_v5 = vld [vmem:[%s220_s28 + $0x18] sm:$0xff]  ;;  %v1165_v6 = vld [vmem:[%s220_s28 + $0x20] sm:$0xff]  ;;  %v1169_v7 = vld [vmem:[%s220_s28 + $0x28] sm:$0xff] }
  0x10   : > { %v1173_v8 = vld [vmem:[%s220_s28 + $0x30] sm:$0xff]  ;;  %v1177_v9 = vld [vmem:[%s220_s28 + $0x38] sm:$0xff]  ;;  %361 = vmatpush.msra.mxu1 %v320_v11  ;;  %1052 = vmatmul.msk.f32.vlgmr.msra.gmra.mxu3 %vm419_vm1, %v1222_v29  ;;  %v416_v30 = vld [vmem:[%s1332_s4] sm:$0xff] }
  0x11   : > { %493 = vperm.xlu0 %1086, %v416_v30  }
  0x12   : > { %871 = vmatpush.msrb.mxu1 %v1173_v8 }
  0x17   : > { %1034 = vmatmul.msk.f32.gmra.mxu0 %vm238_vm0, %v1153_v3 }
  0x1f   : > { %1035 = vmatmul.msk.f32.gmra.mxu0 %vm238_vm0, %v1157_v4 }
  0x27   : > { %1036 = vmatmul.msk.f32.gmra.mxu0 %vm238_vm0, %v1161_v5 }
  0x2f   : > { %1037 = vmatmul.msk.f32.gmra.mxu0 %vm238_vm0, %v1165_v6 }
  0x37   : > { %1038 = vmatmul.msk.f32.gmra.mxu0 %vm238_vm0, %v1169_v7 }
  0x3f   : > { %1039 = vmatmul.msk.f32.gmra.mxu0 %vm238_vm0, %v1173_v8 }
  0x47   : > { %1040 = vmatmul.msk.f32.gmra.mxu0 %vm238_vm0, %v1177_v9 }
  0x83   : > { %v494_v62 = vpop.permute.xlu0 %493 }
  0x8c   : > { %v280_v12 = vpop.f32.mrf.mxu0 }
  0x8d   : > { %304 = vst.msk [vmem:[#allocation2] sm:$0xff] %vm238_vm0, %v280_v12 }
  0x93   : > { %v463_v57 = vpop.f32.mrf.mxu3 }
  0x94   : > { %v283_v13 = vpop.f32.mrf.mxu0  ;;  %v312_v14 = vld [vmem:[#allocation2] sm:$0xff] }
  0x95   : > { %305 = vst.msk [vmem:[#allocation2 + $0x8] sm:$0xff] %vm238_vm0, %v283_v13  ;;  %1041 = vmatmul.msk.f32.vlgmr.msra.gmra.mxu1 %vm238_vm0, %v312_v14  ;;  %438 = vmatpush.msra.mxu2 %v312_v14 }
  0x96   : > { %1051 = vmatmul.msk.f32.vlgmr.msra.gmra.mxu2 %vm419_vm1, %v1217_v28 }
  0x9c   : > { %v313_v15 = vld [vmem:[#allocation2 + $0x8] sm:$0xff]  ;;  %v286_v16 = vpop.f32.mrf.mxu0 }
  0x9d   : > { %1042 = vmatmul.msk.f32.gmra.mxu1 %vm238_vm0, %v313_v15  ;;  %516 = vmatpush.msrb.mxu3 %v313_v15  ;;  %306 = vst.msk [vmem:[#allocation2 + $0x10] sm:$0xff] %vm238_vm0, %v286_v16 }
  0x9e   : > { %1054 = vmatmul.msk.f32.vlgmr.msrb.gmra.mxu3 %vm419_vm1, %v1217_v28 }
  0xa4   : > { %v289_v17 = vpop.f32.mrf.mxu0  ;;  %v314_v18 = vld [vmem:[#allocation2 + $0x10] sm:$0xff] }
  0xa5   : > { %307 = vst.msk [vmem:[#allocation2 + $0x18] sm:$0xff] %vm238_vm0, %v289_v17  ;;  %1043 = vmatmul.msk.f32.gmra.mxu1 %vm238_vm0, %v314_v18 }
  0xac   : > { %v292_v19 = vpop.f32.mrf.mxu0  ;;  %v315_v20 = vld [vmem:[#allocation2 + $0x18] sm:$0xff] }
  0xad   : > { %308 = vst.msk [vmem:[#allocation2 + $0x20] sm:$0xff] %vm238_vm0, %v292_v19  ;;  %1044 = vmatmul.msk.f32.gmra.mxu1 %vm238_vm0, %v315_v20 }
  0xb4   : > { %v295_v21 = vpop.f32.mrf.mxu0  ;;  %v1197_v22 = vld [vmem:[#allocation2 + $0x20] sm:$0xff] }
  0xb5   : > { %309 = vst.msk [vmem:[#allocation2 + $0x28] sm:$0xff] %vm238_vm0, %v295_v21  ;;  %1045 = vmatmul.msk.f32.gmra.mxu1 %vm238_vm0, %v1197_v22 }
  0xbc   : > { %v1202_v23 = vld [vmem:[#allocation2 + $0x28] sm:$0xff]  ;;  %v298_v24 = vpop.f32.mrf.mxu0 }
  0xbd   : > { %1046 = vmatmul.msk.f32.gmra.mxu1 %vm238_vm0, %v1202_v23  ;;  %310 = vst.msk [vmem:[#allocation2 + $0x30] sm:$0xff] %vm238_vm0, %v298_v24 }
  0xc4   : > { %v301_v25 = vpop.f32.mrf.mxu0  ;;  %v318_v26 = vld [vmem:[#allocation2 + $0x30] sm:$0xff] }
  0xc5   : > { %311 = vst.msk [vmem:[#allocation2 + $0x38] sm:$0xff] %vm238_vm0, %v301_v25  ;;  %1047 = vmatmul.msk.f32.gmra.mxu1 %vm238_vm0, %v318_v26  ;;  %851 = vmatpush.msrb.mxu0 %v318_v26 }
  0xc6   : > { %1069 = vmatmul.msk.f32.vlgmr.msrb.gmra.mxu0 %vm419_vm1, %v1217_v28 }
  0xc7   : > { %938 = vmatpush.msra.mxu0 %v1177_v9 }
  0xcc   : > { %v1210_v27 = vld [vmem:[#allocation2 + $0x38] sm:$0xff] }
  0xcd   : > { %1048 = vmatmul.msk.f32.gmra.mxu1 %vm238_vm0, %v1210_v27 }
  0xce   : > { %1073 = vmatmul.msk.f32.vlgmr.msra.gmra.mxu0 %vm419_vm1, %v1222_v29 }
  0xd5   : > { %1070 = vmatmul.msk.f32.vlgmr.msrb.gmra.mxu1 %vm419_vm1, %v1222_v29 }
 0x112   : > { %v363_v32 = vpop.f32.mrf.mxu1 }
 0x113   : > { %v395_v33 = vsub.f32 %v363_v32, %v1148_v2 }
 0x115   : > { %403 = vst.msk [vmem:[#allocation2 + $0x40] sm:$0xff] %vm238_vm0, %v395_v33 }
 0x119   : > { %v440_v58 = vpop.f32.mrf.mxu2 }
 0x11a   : > { %v366_v34 = vpop.f32.mrf.mxu1  ;;  %v464_v60 = vadd.f32 %v463_v57, %v440_v58 }
 0x11b   : > { %v396_v35 = vsub.f32 %v366_v34, %v1153_v3 }
 0x11c   : > { %v466_v37 = vld [vmem:[#allocation2 + $0x40] sm:$0xff] }
 0x11d   : > { %404 = vst.msk [vmem:[#allocation2 + $0x48] sm:$0xff] %vm238_vm0, %v396_v35  ;;  %485 = vmatpush.msrb.mxu2 %v466_v37 }
 0x11e   : > { %1053 = vmatmul.msk.f32.vlgmr.msrb.gmra.mxu2 %vm419_vm1, %v1050_v36 }
 0x11f   : > { %536 = vmatpush.msra.mxu2 %v1153_v3 }
 0x121   : > { %583 = vmatpush.msrb.mxu2 %v314_v18  ;;  %v518_v59 = vpop.f32.mrf.mxu3 }
 0x122   : > { %v369_v38 = vpop.f32.mrf.mxu1 }
 0x123   : > { %v397_v39 = vsub.f32 %v369_v38, %v1157_v4 }
 0x124   : > { %v541_v40 = vld [vmem:[#allocation2 + $0x48] sm:$0xff] }
 0x125   : > { %557 = vmatpush.msra.mxu3 %v541_v40  ;;  %405 = vst.msk [vmem:[#allocation2 + $0x50] sm:$0xff] %vm238_vm0, %v397_v39 }
 0x126   : > { %1055 = vmatmul.msk.f32.vlgmr.msra.gmra.mxu2 %vm419_vm1, %v1222_v29  ;;  %1056 = vmatmul.msk.f32.vlgmr.msra.gmra.mxu3 %vm419_vm1, %v1050_v36 }
 0x127   : > { %603 = vmatpush.msrb.mxu3 %v1157_v4 }
 0x129   : > { %650 = vmatpush.msra.mxu3 %v315_v20 }
 0x12a   : > { %v372_v41 = vpop.f32.mrf.mxu1 }
 0x12b   : > { %v398_v42 = vsub.f32 %v372_v41, %v1161_v5 }
 0x12c   : > { %v608_v43 = vld [vmem:[#allocation2 + $0x50] sm:$0xff] }
 0x12d   : > { %406 = vst.msk [vmem:[#allocation2 + $0x58] sm:$0xff] %vm238_vm0, %v398_v42  ;;  %624 = vmatpush.msra.mxu2 %v608_v43 }
 0x12e   : > { %1057 = vmatmul.msk.f32.vlgmr.msrb.gmra.mxu2 %vm419_vm1, %v1217_v28  ;;  %1058 = vmatmul.msk.f32.vlgmr.msrb.gmra.mxu3 %vm419_vm1, %v1222_v29 }
 0x12f   : > { %670 = vmatpush.msrb.mxu2 %v1161_v5 }
 0x132   : > { %v375_v44 = vpop.f32.mrf.mxu1 }
 0x133   : > { %v399_v45 = vsub.f32 %v375_v44, %v1165_v6 }
 0x134   : > { %v675_v46 = vld [vmem:[#allocation2 + $0x58] sm:$0xff] }
 0x135   : > { %407 = vst.msk [vmem:[#allocation2 + $0x60] sm:$0xff] %vm238_vm0, %v399_v45  ;;  %691 = vmatpush.msrb.mxu3 %v675_v46 }
 0x136   : > { %1059 = vmatmul.msk.f32.vlgmr.msra.gmra.mxu2 %vm419_vm1, %v1050_v36  ;;  %1060 = vmatmul.msk.f32.vlgmr.msra.gmra.mxu3 %vm419_vm1, %v1217_v28 }
 0x137   : > { %717 = vmatpush.msra.mxu2 %v1197_v22  ;;  %737 = vmatpush.msra.mxu3 %v1165_v6 }
 0x13a   : > { %v378_v47 = vpop.f32.mrf.mxu1 }
 0x13b   : > { %v400_v48 = vsub.f32 %v378_v47, %v1169_v7 }
 0x13c   : > { %v742_v49 = vld [vmem:[#allocation2 + $0x60] sm:$0xff] }
 0x13d   : > { %408 = vst.msk [vmem:[#allocation2 + $0x68] sm:$0xff] %vm238_vm0, %v400_v48 }
 0x13e   : > { %1061 = vmatmul.msk.f32.vlgmr.msrb.gmra.mxu2 %vm419_vm1, %v1222_v29  ;;  %1062 = vmatmul.msk.f32.vlgmr.msrb.gmra.mxu3 %vm419_vm1, %v1050_v36 }
 0x13f   : > { %784 = vmatpush.msrb.mxu3 %v1202_v23  ;;  %758 = vmatpush.msrb.mxu2 %v742_v49 }
 0x142   : > { %v381_v50 = vpop.f32.mrf.mxu1 }
 0x143   : > { %v401_v51 = vsub.f32 %v381_v50, %v1173_v8 }
 0x144   : > { %v809_v52 = vld [vmem:[#allocation2 + $0x68] sm:$0xff] }
 0x145   : > { %409 = vst.msk [vmem:[#allocation2 + $0x70] sm:$0xff] %vm238_vm0, %v401_v51 }
 0x146   : > { %1063 = vmatmul.msk.f32.vlgmr.msra.gmra.mxu2 %vm419_vm1, %v1217_v28  ;;  %1064 = vmatmul.msk.f32.vlgmr.msra.gmra.mxu3 %vm419_vm1, %v1222_v29 }
 0x147   : > { %825 = vmatpush.msra.mxu3 %v809_v52  ;;  %804 = vmatpush.msra.mxu2 %v1169_v7 }
 0x14a   : > { %v384_v53 = vpop.f32.mrf.mxu1 }
 0x14b   : > { %v402_v54 = vsub.f32 %v384_v53, %v1177_v9 }
 0x14c   : > { %v876_v55 = vld [vmem:[#allocation2 + $0x70] sm:$0xff] }
 0x14d   : > { %410 = vst.msk [vmem:[#allocation2 + $0x78] sm:$0xff] %vm238_vm0, %v402_v54 }
 0x14e   : > { %1065 = vmatmul.msk.f32.vlgmr.msrb.gmra.mxu2 %vm419_vm1, %v1050_v36  ;;  %1066 = vmatmul.msk.f32.vlgmr.msrb.gmra.mxu3 %vm419_vm1, %v1217_v28 }
 0x14f   : > { %918 = vmatpush.msrb.mxu3 %v1210_v27  ;;  %892 = vmatpush.msrb.mxu2 %v876_v55 }
 0x154   : > { %v943_v56 = vld [vmem:[#allocation2 + $0x78] sm:$0xff] }
 0x155   : > { %959 = vmatpush.msra.mxu1 %v943_v56 }
 0x156   : > { %1067 = vmatmul.msk.f32.vlgmr.msra.gmra.mxu2 %vm419_vm1, %v1222_v29  ;;  %1068 = vmatmul.msk.f32.vlgmr.msra.gmra.mxu3 %vm419_vm1, %v1050_v36 }
 0x157   : > { %1074 = vmatmul.msk.f32.vlgmr.msra.gmra.mxu1 %vm419_vm1, %v1050_v36 }
 0x15e   : > { %1071 = vmatmul.msk.f32.vlgmr.msrb.gmra.mxu2 %vm419_vm1, %v1050_v36  ;;  %1072 = vmatmul.msk.f32.vlgmr.msrb.gmra.mxu3 %vm419_vm1, %v1217_v28  ;;  %v873_v36 = vpop.f32.mrf.mxu1 }
 0x1a1   : > { %v487_v61 = vpop.f32.mrf.mxu2 }
 0x1a2   : > { %v490_v63 = vadd.f32 %v487_v61, %v464_v60 }
 0x1a4   : > { %v496_v0 = vadd.f32 %v494_v62, %v490_v63 }
 0x1a6   : > { %v497_v1 = vadd.f32 %v496_v0, %v1148_v2 }
 0x1a8   : > { %498 = vst.msk [vmem:[%s1299_s19] sm:$0xff] %vm238_vm0, %v497_v1 }
 0x1a9   : > { %v538_v10 = vpop.f32.mrf.mxu2  ;;  %v559_v11 = vpop.f32.mrf.mxu3 }
 0x1aa   : > { %v539_v12 = vadd.f32 %v538_v10, %v518_v59 }
 0x1ac   : > { %v562_v13 = vadd.f32 %v559_v11, %v539_v12 }
 0x1ae   : > { %v563_v14 = vadd.f32 %v562_v13, %v494_v62 }
 0x1b0   : > { %v564_v15 = vadd.f32 %v563_v14, %v1153_v3 }
 0x1b1   : > { %v585_v16 = vpop.f32.mrf.mxu2  ;;  %v605_v17 = vpop.f32.mrf.mxu3 }
 0x1b2   : > { %565 = vst.msk [vmem:[%s1299_s19 + $0x8] sm:$0xff] %vm238_vm0, %v564_v15  ;;  %v606_v18 = vadd.f32 %v605_v17, %v585_v16 }
 0x1b9   : > { %v626_v19 = vpop.f32.mrf.mxu2  ;;  %v652_v20 = vpop.f32.mrf.mxu3 }
 0x1ba   : > { %v629_v21 = vadd.f32 %v626_v19, %v606_v18 }
 0x1bc   : > { %v630_v2 = vadd.f32 %v629_v21, %v494_v62 }
 0x1be   : > { %v631_v22 = vadd.f32 %v630_v2, %v1157_v4  ;;  %v853_v4 = vpop.f32.mrf.mxu0 }
 0x1bf   : > { %v874_v43 = vadd.f32 %v873_v36, %v853_v4 }
 0x1c0   : > { %632 = vst.msk [vmem:[%s1299_s19 + $0x10] sm:$0xff] %vm238_vm0, %v631_v22 }
 0x1c1   : > { %v672_v23 = vpop.f32.mrf.mxu2  ;;  %v693_v24 = vpop.f32.mrf.mxu3 }
 0x1c2   : > { %v673_v25 = vadd.f32 %v672_v23, %v652_v20 }
 0x1c4   : > { %v696_v26 = vadd.f32 %v693_v24, %v673_v25 }
 0x1c6   : > { %v697_v3 = vadd.f32 %v696_v26, %v494_v62  ;;  %v940_v41 = vpop.f32.mrf.mxu0 }
 0x1c8   : > { %v698_v27 = vadd.f32 %v697_v3, %v1161_v5 }
 0x1c9   : > { %v719_v28 = vpop.f32.mrf.mxu2  ;;  %v739_v29 = vpop.f32.mrf.mxu3 }
 0x1ca   : > { %699 = vst.msk [vmem:[%s1299_s19 + $0x18] sm:$0xff] %vm238_vm0, %v698_v27  ;;  %v740_v30 = vadd.f32 %v739_v29, %v719_v28 }
 0x1d1   : > { %v760_v31 = vpop.f32.mrf.mxu2  ;;  %v786_v32 = vpop.f32.mrf.mxu3 }
 0x1d2   : > { %v763_v33 = vadd.f32 %v760_v31, %v740_v30 }
 0x1d4   : > { %v764_v34 = vadd.f32 %v763_v33, %v494_v62  ;;  %v961_v44 = vpop.f32.mrf.mxu1 }
 0x1d6   : > { %v765_v35 = vadd.f32 %v764_v34, %v1165_v6 }
 0x1d8   : > { %766 = vst.msk [vmem:[%s1299_s19 + $0x20] sm:$0xff] %vm238_vm0, %v765_v35 }
 0x1d9   : > { %v806_v37 = vpop.f32.mrf.mxu2  ;;  %v827_v38 = vpop.f32.mrf.mxu3 }
 0x1da   : > { %v807_v39 = vadd.f32 %v806_v37, %v786_v32 }
 0x1dc   : > { %v830_v5 = vadd.f32 %v827_v38, %v807_v39 }
 0x1de   : > { %v831_v40 = vadd.f32 %v830_v5, %v494_v62 }
 0x1e0   : > { %v832_v42 = vadd.f32 %v831_v40, %v1169_v7 }
 0x1e1   : > { %v894_v45 = vpop.f32.mrf.mxu2  ;;  %v920_v46 = vpop.f32.mrf.mxu3 }
 0x1e2   : > { %833 = vst.msk [vmem:[%s1299_s19 + $0x28] sm:$0xff] %vm238_vm0, %v832_v42  ;;  %v897_v6 = vadd.f32 %v894_v45, %v874_v43  ;;  %v941_v47 = vadd.f32 %v940_v41, %v920_v46 }
 0x1e4   : > { %v898_v48 = vadd.f32 %v897_v6, %v494_v62  ;;  %v964_v49 = vadd.f32 %v961_v44, %v941_v47 }
 0x1e6   : > { %v899_v50 = vadd.f32 %v898_v48, %v1173_v8  ;;  %v965_v51 = vadd.f32 %v964_v49, %v494_v62 }
 0x1e8   : > { %900 = vst.msk [vmem:[%s1299_s19 + $0x30] sm:$0xff] %vm238_vm0, %v899_v50  ;;  %v966_v52 = vadd.f32 %v965_v51, %v1177_v9 }
 0x1ea   : > { %967 = vst.msk [vmem:[%s1299_s19 + $0x38] sm:$0xff] %vm238_vm0, %v966_v52 }
 0x1eb PF: > { %s15_s18 = sadd.s32 1, %s1093_s18  }
 0x1ec   : > { %p12_p4 = scmp.ge.s32.totalorder %s15_s18, 4  }
 0x1ee   :  { %14 = sbr.rel (!%p12_p4) target bundleno = 1 (0x1), region = 72 }

</bundles_post_ra>
